<compile_context>
chip_gen: v5e
topology: v5e:2x2
jax: 0.10.0
libtpu: 0.0.40
codegen_flags: <defaults>
</compile_context>

<pallas_src>
import functools

import jax
import jax.numpy as jnp
from jax import lax
from jax.experimental import pallas as pl
from jax.experimental.pallas import tpu as pltpu


def _lstm_last_linear_kernel(x_ref, wih_ref, whh_ref, b_ref, wlin_ref, blin_ref,
                             out_ref, *, seq_len, batch):
    """Whole sequence in one invocation.

    x_ref:    (T*B, I)   time-major, flattened
    wih_ref:  (I, 4H)    gate columns [i, f, o, g]
    whh_ref:  (H, 4H)    gate columns [i, f, o, g]
    b_ref:    (1, 4H)    b_ih + b_hh, same column order
    wlin_ref: (H, horizon), blin_ref: (1, horizon)
    out_ref:  (B, horizon)
    """
    H = whh_ref.shape[0]

    # Hoisted (non-recurrent) input projection: one (T*B, I) @ (I, 4H) MXU matmul.
    xg = jnp.dot(x_ref[...], wih_ref[...],
                 preferred_element_type=jnp.float32) + b_ref[...]

    whh = whh_ref[...]
    h = jnp.zeros((batch, H), jnp.float32)
    c = jnp.zeros((batch, H), jnp.float32)

    # Static unroll over time (T is a small compile-time constant); h/c stay in vregs.
    for t in range(seq_len):
        gates = xg[t * batch:(t + 1) * batch, :] + jnp.dot(
            h, whh, preferred_element_type=jnp.float32)
        sig = jax.nn.sigmoid(gates[:, :3 * H])   # [i | f | o] in one contiguous lane slice
        g = jnp.tanh(gates[:, 3 * H:])
        i = sig[:, 0 * H:1 * H]
        f = sig[:, 1 * H:2 * H]
        o = sig[:, 2 * H:3 * H]
        c = f * c + i * g
        h = o * jnp.tanh(c)

    # Output Linear on the last hidden state.
    out_ref[...] = (jnp.dot(h, wlin_ref[...], preferred_element_type=jnp.float32)
                    + blin_ref[...]).astype(out_ref.dtype)


def seq2seq_lstm_forward(x_btI, w_ih, w_hh, b_ih, b_hh, w_lin, b_lin):
    """x_btI: (B, T, I) like PyTorch batch_first. Returns (B, horizon)."""
    B, T, I = x_btI.shape
    H = w_hh.shape[1]
    horizon = w_lin.shape[0]

    # Layout plumbing (outside the kernel): time-major + flatten, weight transpose,
    # and gate-column re-pack [i, f, g, o] -> [i, f, o, g].
    x_flat = jnp.transpose(x_btI, (1, 0, 2)).reshape(T * B, I)      # (T*B, I)

    def repack(w):  # last-axis columns [i,f,g,o] -> [i,f,o,g]
        return jnp.concatenate(
            [w[..., 0:2 * H], w[..., 3 * H:4 * H], w[..., 2 * H:3 * H]], axis=-1)

    wih_t = repack(jnp.transpose(w_ih, (1, 0)))                     # (I, 4H)
    whh_t = repack(jnp.transpose(w_hh, (1, 0)))                     # (H, 4H)
    b_comb = repack((b_ih + b_hh).reshape(1, 4 * H))                # (1, 4H)
    wlin_t = jnp.transpose(w_lin, (1, 0))                           # (H, horizon)
    blin_2d = b_lin.reshape(1, horizon)                             # (1, horizon)

    kernel = functools.partial(_lstm_last_linear_kernel, seq_len=T, batch=B)

    vmem_specs = [pl.BlockSpec(memory_space=pltpu.MemorySpace.VMEM) for _ in range(6)]
    return pl.pallas_call(
        kernel,
        out_shape=jax.ShapeDtypeStruct((B, horizon), jnp.float32),
        in_specs=vmem_specs,
        out_specs=pl.BlockSpec(memory_space=pltpu.MemorySpace.VMEM),
    )(x_flat, wih_t, whh_t, b_comb, wlin_t, blin_2d)


def _reference_forward(x, w_ih, w_hh, b_ih, b_hh, w_lin, b_lin):
    """Pure-JAX reference matching PyTorch nn.LSTM + nn.Linear semantics."""
    B, T, I = x.shape
    H = w_hh.shape[1]

    def step(carry, x_t):
        h, c = carry
        gates = x_t @ w_ih.T + b_ih + h @ w_hh.T + b_hh
        i = jax.nn.sigmoid(gates[:, 0 * H:1 * H])
        f = jax.nn.sigmoid(gates[:, 1 * H:2 * H])
        g = jnp.tanh(gates[:, 2 * H:3 * H])
        o = jax.nn.sigmoid(gates[:, 3 * H:4 * H])
        c = f * c + i * g
        h = o * jnp.tanh(c)
        return (h, c), h

    h0 = jnp.zeros((B, H), jnp.float32)
    c0 = jnp.zeros((B, H), jnp.float32)
    (h_last, _), _ = lax.scan(step, (h0, c0), jnp.transpose(x, (1, 0, 2)))
    return h_last @ w_lin.T + b_lin


if __name__ == "__main__":
    # Small shapes consistent with the module: batch=8, seq=8, input=16, hidden=32, horizon=4.
    B, T, INPUT_SIZE, HIDDEN_SIZE, HORIZON = 8, 8, 16, 32, 4

    key = jax.random.PRNGKey(0)
    ks = jax.random.split(key, 8)
    scale = 1.0 / jnp.sqrt(HIDDEN_SIZE)  # PyTorch default uniform(-1/sqrt(H), 1/sqrt(H))

    x = jax.random.normal(ks[0], (B, T, INPUT_SIZE), jnp.float32)
    w_ih = jax.random.uniform(ks[1], (4 * HIDDEN_SIZE, INPUT_SIZE), jnp.float32, -scale, scale)
    w_hh = jax.random.uniform(ks[2], (4 * HIDDEN_SIZE, HIDDEN_SIZE), jnp.float32, -scale, scale)
    b_ih = jax.random.uniform(ks[3], (4 * HIDDEN_SIZE,), jnp.float32, -scale, scale)
    b_hh = jax.random.uniform(ks[4], (4 * HIDDEN_SIZE,), jnp.float32, -scale, scale)
    w_lin = jax.random.uniform(ks[5], (HORIZON, HIDDEN_SIZE), jnp.float32, -scale, scale)
    b_lin = jax.random.uniform(ks[6], (HORIZON,), jnp.float32, -scale, scale)

    out = seq2seq_lstm_forward(x, w_ih, w_hh, b_ih, b_hh, w_lin, b_lin)
    out = jax.block_until_ready(out)

    ref = _reference_forward(x, w_ih, w_hh, b_ih, b_hh, w_lin, b_lin)
    assert out.shape == (B, HORIZON)
    assert jnp.allclose(out, ref, atol=1e-5, rtol=1e-5), "mismatch vs reference"

    print("KERNEL_OK")
</pallas_src>

<mosaic_0001>
module attributes {stable_mosaic.version = 11 : i64} {
  func.func @_lstm_last_linear_kernel(%arg0: memref<64x16xf32, #tpu.memory_space<vmem>>, %arg1: memref<16x128xf32, #tpu.memory_space<vmem>>, %arg2: memref<32x128xf32, #tpu.memory_space<vmem>>, %arg3: memref<1x128xf32, #tpu.memory_space<vmem>>, %arg4: memref<32x4xf32, #tpu.memory_space<vmem>>, %arg5: memref<1x4xf32, #tpu.memory_space<vmem>>, %arg6: memref<8x4xf32, #tpu.memory_space<vmem>>) attributes {dimension_semantics = [], scalar_prefetch = 0 : i64, scratch_operands = 0 : i64, tpu.core_type = #tpu.core_type<tc>} {
    %c0 = arith.constant 0 : index
    %c0_0 = arith.constant 0 : index
    %0 = vector.load %arg0[%c0, %c0_0] : memref<64x16xf32, #tpu.memory_space<vmem>>, vector<64x16xf32>
    %c0_1 = arith.constant 0 : index
    %c0_2 = arith.constant 0 : index
    %1 = vector.load %arg1[%c0_1, %c0_2] : memref<16x128xf32, #tpu.memory_space<vmem>>, vector<16x128xf32>
    %cst = arith.constant dense<0.000000e+00> : vector<64x128xf32>
    %2 = tpu.matmul %0, %1, %cst {dimension_numbers = #tpu.dot_dimension_numbers<[1], [0], [0], [1], [0, 0, 1, 1], [], []>} : vector<64x16xf32>, vector<16x128xf32>, vector<64x128xf32> -> vector<64x128xf32>
    %c0_3 = arith.constant 0 : index
    %c0_4 = arith.constant 0 : index
    %3 = vector.load %arg3[%c0_3, %c0_4] : memref<1x128xf32, #tpu.memory_space<vmem>>, vector<1x128xf32>
    %4 = vector.broadcast %3 : vector<1x128xf32> to vector<64x128xf32>
    %5 = arith.addf %2, %4 : vector<64x128xf32>
    %c0_5 = arith.constant 0 : index
    %c0_6 = arith.constant 0 : index
    %6 = vector.load %arg2[%c0_5, %c0_6] : memref<32x128xf32, #tpu.memory_space<vmem>>, vector<32x128xf32>
    %cst_7 = arith.constant 0.000000e+00 : f32
    %7 = vector.broadcast %cst_7 : f32 to vector<8x32xf32>
    %cst_8 = arith.constant 0.000000e+00 : f32
    %8 = vector.broadcast %cst_8 : f32 to vector<8x32xf32>
    %9 = vector.extract_strided_slice %5 {offsets = [0, 0], sizes = [8, 128], strides = [1, 1]} : vector<64x128xf32> to vector<8x128xf32>
    %cst_9 = arith.constant dense<0.000000e+00> : vector<8x128xf32>
    %10 = tpu.matmul %7, %6, %cst_9 {dimension_numbers = #tpu.dot_dimension_numbers<[1], [0], [0], [1], [0, 0, 1, 1], [], []>} : vector<8x32xf32>, vector<32x128xf32>, vector<8x128xf32> -> vector<8x128xf32>
    %11 = arith.addf %9, %10 : vector<8x128xf32>
    %12 = vector.extract_strided_slice %11 {offsets = [0, 0], sizes = [8, 96], strides = [1, 1]} : vector<8x128xf32> to vector<8x96xf32>
    %13 = arith.negf %12 : vector<8x96xf32>
    %14 = math.exp %13 : vector<8x96xf32>
    %cst_10 = arith.constant 1.000000e+00 : f32
    %15 = vector.broadcast %cst_10 : f32 to vector<8x96xf32>
    %16 = arith.addf %15, %14 : vector<8x96xf32>
    %17 = arith.divf %15, %16 : vector<8x96xf32>
    %18 = vector.extract_strided_slice %11 {offsets = [0, 96], sizes = [8, 32], strides = [1, 1]} : vector<8x128xf32> to vector<8x32xf32>
    %19 = math.tanh %18 : vector<8x32xf32>
    %20 = vector.extract_strided_slice %17 {offsets = [0, 0], sizes = [8, 32], strides = [1, 1]} : vector<8x96xf32> to vector<8x32xf32>
    %21 = vector.extract_strided_slice %17 {offsets = [0, 32], sizes = [8, 32], strides = [1, 1]} : vector<8x96xf32> to vector<8x32xf32>
    %22 = vector.extract_strided_slice %17 {offsets = [0, 64], sizes = [8, 32], strides = [1, 1]} : vector<8x96xf32> to vector<8x32xf32>
    %23 = arith.mulf %21, %8 : vector<8x32xf32>
    %24 = arith.mulf %20, %19 : vector<8x32xf32>
    %25 = arith.addf %23, %24 : vector<8x32xf32>
    %26 = math.tanh %25 : vector<8x32xf32>
    %27 = arith.mulf %22, %26 : vector<8x32xf32>
    %28 = vector.extract_strided_slice %5 {offsets = [8, 0], sizes = [8, 128], strides = [1, 1]} : vector<64x128xf32> to vector<8x128xf32>
    %cst_11 = arith.constant dense<0.000000e+00> : vector<8x128xf32>
    %29 = tpu.matmul %27, %6, %cst_11 {dimension_numbers = #tpu.dot_dimension_numbers<[1], [0], [0], [1], [0, 0, 1, 1], [], []>} : vector<8x32xf32>, vector<32x128xf32>, vector<8x128xf32> -> vector<8x128xf32>
    %30 = arith.addf %28, %29 : vector<8x128xf32>
    %31 = vector.extract_strided_slice %30 {offsets = [0, 0], sizes = [8, 96], strides = [1, 1]} : vector<8x128xf32> to vector<8x96xf32>
    %32 = arith.negf %31 : vector<8x96xf32>
    %33 = math.exp %32 : vector<8x96xf32>
    %cst_12 = arith.constant 1.000000e+00 : f32
    %34 = vector.broadcast %cst_12 : f32 to vector<8x96xf32>
    %35 = arith.addf %34, %33 : vector<8x96xf32>
    %36 = arith.divf %34, %35 : vector<8x96xf32>
    %37 = vector.extract_strided_slice %30 {offsets = [0, 96], sizes = [8, 32], strides = [1, 1]} : vector<8x128xf32> to vector<8x32xf32>
    %38 = math.tanh %37 : vector<8x32xf32>
    %39 = vector.extract_strided_slice %36 {offsets = [0, 0], sizes = [8, 32], strides = [1, 1]} : vector<8x96xf32> to vector<8x32xf32>
    %40 = vector.extract_strided_slice %36 {offsets = [0, 32], sizes = [8, 32], strides = [1, 1]} : vector<8x96xf32> to vector<8x32xf32>
    %41 = vector.extract_strided_slice %36 {offsets = [0, 64], sizes = [8, 32], strides = [1, 1]} : vector<8x96xf32> to vector<8x32xf32>
    %42 = arith.mulf %40, %25 : vector<8x32xf32>
    %43 = arith.mulf %39, %38 : vector<8x32xf32>
    %44 = arith.addf %42, %43 : vector<8x32xf32>
    %45 = math.tanh %44 : vector<8x32xf32>
    %46 = arith.mulf %41, %45 : vector<8x32xf32>
    %47 = vector.extract_strided_slice %5 {offsets = [16, 0], sizes = [8, 128], strides = [1, 1]} : vector<64x128xf32> to vector<8x128xf32>
    %cst_13 = arith.constant dense<0.000000e+00> : vector<8x128xf32>
    %48 = tpu.matmul %46, %6, %cst_13 {dimension_numbers = #tpu.dot_dimension_numbers<[1], [0], [0], [1], [0, 0, 1, 1], [], []>} : vector<8x32xf32>, vector<32x128xf32>, vector<8x128xf32> -> vector<8x128xf32>
    %49 = arith.addf %47, %48 : vector<8x128xf32>
    %50 = vector.extract_strided_slice %49 {offsets = [0, 0], sizes = [8, 96], strides = [1, 1]} : vector<8x128xf32> to vector<8x96xf32>
    %51 = arith.negf %50 : vector<8x96xf32>
    %52 = math.exp %51 : vector<8x96xf32>
    %cst_14 = arith.constant 1.000000e+00 : f32
    %53 = vector.broadcast %cst_14 : f32 to vector<8x96xf32>
    %54 = arith.addf %53, %52 : vector<8x96xf32>
    %55 = arith.divf %53, %54 : vector<8x96xf32>
    %56 = vector.extract_strided_slice %49 {offsets = [0, 96], sizes = [8, 32], strides = [1, 1]} : vector<8x128xf32> to vector<8x32xf32>
    %57 = math.tanh %56 : vector<8x32xf32>
    %58 = vector.extract_strided_slice %55 {offsets = [0, 0], sizes = [8, 32], strides = [1, 1]} : vector<8x96xf32> to vector<8x32xf32>
    %59 = vector.extract_strided_slice %55 {offsets = [0, 32], sizes = [8, 32], strides = [1, 1]} : vector<8x96xf32> to vector<8x32xf32>
    %60 = vector.extract_strided_slice %55 {offsets = [0, 64], sizes = [8, 32], strides = [1, 1]} : vector<8x96xf32> to vector<8x32xf32>
    %61 = arith.mulf %59, %44 : vector<8x32xf32>
    %62 = arith.mulf %58, %57 : vector<8x32xf32>
    %63 = arith.addf %61, %62 : vector<8x32xf32>
    %64 = math.tanh %63 : vector<8x32xf32>
    %65 = arith.mulf %60, %64 : vector<8x32xf32>
    %66 = vector.extract_strided_slice %5 {offsets = [24, 0], sizes = [8, 128], strides = [1, 1]} : vector<64x128xf32> to vector<8x128xf32>
    %cst_15 = arith.constant dense<0.000000e+00> : vector<8x128xf32>
    %67 = tpu.matmul %65, %6, %cst_15 {dimension_numbers = #tpu.dot_dimension_numbers<[1], [0], [0], [1], [0, 0, 1, 1], [], []>} : vector<8x32xf32>, vector<32x128xf32>, vector<8x128xf32> -> vector<8x128xf32>
    %68 = arith.addf %66, %67 : vector<8x128xf32>
    %69 = vector.extract_strided_slice %68 {offsets = [0, 0], sizes = [8, 96], strides = [1, 1]} : vector<8x128xf32> to vector<8x96xf32>
    %70 = arith.negf %69 : vector<8x96xf32>
    %71 = math.exp %70 : vector<8x96xf32>
    %cst_16 = arith.constant 1.000000e+00 : f32
    %72 = vector.broadcast %cst_16 : f32 to vector<8x96xf32>
    %73 = arith.addf %72, %71 : vector<8x96xf32>
    %74 = arith.divf %72, %73 : vector<8x96xf32>
    %75 = vector.extract_strided_slice %68 {offsets = [0, 96], sizes = [8, 32], strides = [1, 1]} : vector<8x128xf32> to vector<8x32xf32>
    %76 = math.tanh %75 : vector<8x32xf32>
    %77 = vector.extract_strided_slice %74 {offsets = [0, 0], sizes = [8, 32], strides = [1, 1]} : vector<8x96xf32> to vector<8x32xf32>
    %78 = vector.extract_strided_slice %74 {offsets = [0, 32], sizes = [8, 32], strides = [1, 1]} : vector<8x96xf32> to vector<8x32xf32>
    %79 = vector.extract_strided_slice %74 {offsets = [0, 64], sizes = [8, 32], strides = [1, 1]} : vector<8x96xf32> to vector<8x32xf32>
    %80 = arith.mulf %78, %63 : vector<8x32xf32>
    %81 = arith.mulf %77, %76 : vector<8x32xf32>
    %82 = arith.addf %80, %81 : vector<8x32xf32>
    %83 = math.tanh %82 : vector<8x32xf32>
    %84 = arith.mulf %79, %83 : vector<8x32xf32>
    %85 = vector.extract_strided_slice %5 {offsets = [32, 0], sizes = [8, 128], strides = [1, 1]} : vector<64x128xf32> to vector<8x128xf32>
    %cst_17 = arith.constant dense<0.000000e+00> : vector<8x128xf32>
    %86 = tpu.matmul %84, %6, %cst_17 {dimension_numbers = #tpu.dot_dimension_numbers<[1], [0], [0], [1], [0, 0, 1, 1], [], []>} : vector<8x32xf32>, vector<32x128xf32>, vector<8x128xf32> -> vector<8x128xf32>
    %87 = arith.addf %85, %86 : vector<8x128xf32>
    %88 = vector.extract_strided_slice %87 {offsets = [0, 0], sizes = [8, 96], strides = [1, 1]} : vector<8x128xf32> to vector<8x96xf32>
    %89 = arith.negf %88 : vector<8x96xf32>
    %90 = math.exp %89 : vector<8x96xf32>
    %cst_18 = arith.constant 1.000000e+00 : f32
    %91 = vector.broadcast %cst_18 : f32 to vector<8x96xf32>
    %92 = arith.addf %91, %90 : vector<8x96xf32>
    %93 = arith.divf %91, %92 : vector<8x96xf32>
    %94 = vector.extract_strided_slice %87 {offsets = [0, 96], sizes = [8, 32], strides = [1, 1]} : vector<8x128xf32> to vector<8x32xf32>
    %95 = math.tanh %94 : vector<8x32xf32>
    %96 = vector.extract_strided_slice %93 {offsets = [0, 0], sizes = [8, 32], strides = [1, 1]} : vector<8x96xf32> to vector<8x32xf32>
    %97 = vector.extract_strided_slice %93 {offsets = [0, 32], sizes = [8, 32], strides = [1, 1]} : vector<8x96xf32> to vector<8x32xf32>
    %98 = vector.extract_strided_slice %93 {offsets = [0, 64], sizes = [8, 32], strides = [1, 1]} : vector<8x96xf32> to vector<8x32xf32>
    %99 = arith.mulf %97, %82 : vector<8x32xf32>
    %100 = arith.mulf %96, %95 : vector<8x32xf32>
    %101 = arith.addf %99, %100 : vector<8x32xf32>
    %102 = math.tanh %101 : vector<8x32xf32>
    %103 = arith.mulf %98, %102 : vector<8x32xf32>
    %104 = vector.extract_strided_slice %5 {offsets = [40, 0], sizes = [8, 128], strides = [1, 1]} : vector<64x128xf32> to vector<8x128xf32>
    %cst_19 = arith.constant dense<0.000000e+00> : vector<8x128xf32>
    %105 = tpu.matmul %103, %6, %cst_19 {dimension_numbers = #tpu.dot_dimension_numbers<[1], [0], [0], [1], [0, 0, 1, 1], [], []>} : vector<8x32xf32>, vector<32x128xf32>, vector<8x128xf32> -> vector<8x128xf32>
    %106 = arith.addf %104, %105 : vector<8x128xf32>
    %107 = vector.extract_strided_slice %106 {offsets = [0, 0], sizes = [8, 96], strides = [1, 1]} : vector<8x128xf32> to vector<8x96xf32>
    %108 = arith.negf %107 : vector<8x96xf32>
    %109 = math.exp %108 : vector<8x96xf32>
    %cst_20 = arith.constant 1.000000e+00 : f32
    %110 = vector.broadcast %cst_20 : f32 to vector<8x96xf32>
    %111 = arith.addf %110, %109 : vector<8x96xf32>
    %112 = arith.divf %110, %111 : vector<8x96xf32>
    %113 = vector.extract_strided_slice %106 {offsets = [0, 96], sizes = [8, 32], strides = [1, 1]} : vector<8x128xf32> to vector<8x32xf32>
    %114 = math.tanh %113 : vector<8x32xf32>
    %115 = vector.extract_strided_slice %112 {offsets = [0, 0], sizes = [8, 32], strides = [1, 1]} : vector<8x96xf32> to vector<8x32xf32>
    %116 = vector.extract_strided_slice %112 {offsets = [0, 32], sizes = [8, 32], strides = [1, 1]} : vector<8x96xf32> to vector<8x32xf32>
    %117 = vector.extract_strided_slice %112 {offsets = [0, 64], sizes = [8, 32], strides = [1, 1]} : vector<8x96xf32> to vector<8x32xf32>
    %118 = arith.mulf %116, %101 : vector<8x32xf32>
    %119 = arith.mulf %115, %114 : vector<8x32xf32>
    %120 = arith.addf %118, %119 : vector<8x32xf32>
    %121 = math.tanh %120 : vector<8x32xf32>
    %122 = arith.mulf %117, %121 : vector<8x32xf32>
    %123 = vector.extract_strided_slice %5 {offsets = [48, 0], sizes = [8, 128], strides = [1, 1]} : vector<64x128xf32> to vector<8x128xf32>
    %cst_21 = arith.constant dense<0.000000e+00> : vector<8x128xf32>
    %124 = tpu.matmul %122, %6, %cst_21 {dimension_numbers = #tpu.dot_dimension_numbers<[1], [0], [0], [1], [0, 0, 1, 1], [], []>} : vector<8x32xf32>, vector<32x128xf32>, vector<8x128xf32> -> vector<8x128xf32>
    %125 = arith.addf %123, %124 : vector<8x128xf32>
    %126 = vector.extract_strided_slice %125 {offsets = [0, 0], sizes = [8, 96], strides = [1, 1]} : vector<8x128xf32> to vector<8x96xf32>
    %127 = arith.negf %126 : vector<8x96xf32>
    %128 = math.exp %127 : vector<8x96xf32>
    %cst_22 = arith.constant 1.000000e+00 : f32
    %129 = vector.broadcast %cst_22 : f32 to vector<8x96xf32>
    %130 = arith.addf %129, %128 : vector<8x96xf32>
    %131 = arith.divf %129, %130 : vector<8x96xf32>
    %132 = vector.extract_strided_slice %125 {offsets = [0, 96], sizes = [8, 32], strides = [1, 1]} : vector<8x128xf32> to vector<8x32xf32>
    %133 = math.tanh %132 : vector<8x32xf32>
    %134 = vector.extract_strided_slice %131 {offsets = [0, 0], sizes = [8, 32], strides = [1, 1]} : vector<8x96xf32> to vector<8x32xf32>
    %135 = vector.extract_strided_slice %131 {offsets = [0, 32], sizes = [8, 32], strides = [1, 1]} : vector<8x96xf32> to vector<8x32xf32>
    %136 = vector.extract_strided_slice %131 {offsets = [0, 64], sizes = [8, 32], strides = [1, 1]} : vector<8x96xf32> to vector<8x32xf32>
    %137 = arith.mulf %135, %120 : vector<8x32xf32>
    %138 = arith.mulf %134, %133 : vector<8x32xf32>
    %139 = arith.addf %137, %138 : vector<8x32xf32>
    %140 = math.tanh %139 : vector<8x32xf32>
    %141 = arith.mulf %136, %140 : vector<8x32xf32>
    %142 = vector.extract_strided_slice %5 {offsets = [56, 0], sizes = [8, 128], strides = [1, 1]} : vector<64x128xf32> to vector<8x128xf32>
    %cst_23 = arith.constant dense<0.000000e+00> : vector<8x128xf32>
    %143 = tpu.matmul %141, %6, %cst_23 {dimension_numbers = #tpu.dot_dimension_numbers<[1], [0], [0], [1], [0, 0, 1, 1], [], []>} : vector<8x32xf32>, vector<32x128xf32>, vector<8x128xf32> -> vector<8x128xf32>
    %144 = arith.addf %142, %143 : vector<8x128xf32>
    %145 = vector.extract_strided_slice %144 {offsets = [0, 0], sizes = [8, 96], strides = [1, 1]} : vector<8x128xf32> to vector<8x96xf32>
    %146 = arith.negf %145 : vector<8x96xf32>
    %147 = math.exp %146 : vector<8x96xf32>
    %cst_24 = arith.constant 1.000000e+00 : f32
    %148 = vector.broadcast %cst_24 : f32 to vector<8x96xf32>
    %149 = arith.addf %148, %147 : vector<8x96xf32>
    %150 = arith.divf %148, %149 : vector<8x96xf32>
    %151 = vector.extract_strided_slice %144 {offsets = [0, 96], sizes = [8, 32], strides = [1, 1]} : vector<8x128xf32> to vector<8x32xf32>
    %152 = math.tanh %151 : vector<8x32xf32>
    %153 = vector.extract_strided_slice %150 {offsets = [0, 0], sizes = [8, 32], strides = [1, 1]} : vector<8x96xf32> to vector<8x32xf32>
    %154 = vector.extract_strided_slice %150 {offsets = [0, 32], sizes = [8, 32], strides = [1, 1]} : vector<8x96xf32> to vector<8x32xf32>
    %155 = vector.extract_strided_slice %150 {offsets = [0, 64], sizes = [8, 32], strides = [1, 1]} : vector<8x96xf32> to vector<8x32xf32>
    %156 = arith.mulf %154, %139 : vector<8x32xf32>
    %157 = arith.mulf %153, %152 : vector<8x32xf32>
    %158 = arith.addf %156, %157 : vector<8x32xf32>
    %159 = math.tanh %158 : vector<8x32xf32>
    %160 = arith.mulf %155, %159 : vector<8x32xf32>
    %c0_25 = arith.constant 0 : index
    %c0_26 = arith.constant 0 : index
    %161 = vector.load %arg4[%c0_25, %c0_26] : memref<32x4xf32, #tpu.memory_space<vmem>>, vector<32x4xf32>
    %cst_27 = arith.constant dense<0.000000e+00> : vector<8x4xf32>
    %162 = tpu.matmul %160, %161, %cst_27 {dimension_numbers = #tpu.dot_dimension_numbers<[1], [0], [0], [1], [0, 0, 1, 1], [], []>} : vector<8x32xf32>, vector<32x4xf32>, vector<8x4xf32> -> vector<8x4xf32>
    %c0_28 = arith.constant 0 : index
    %c0_29 = arith.constant 0 : index
    %163 = vector.load %arg5[%c0_28, %c0_29] : memref<1x4xf32, #tpu.memory_space<vmem>>, vector<1x4xf32>
    %164 = vector.broadcast %163 : vector<1x4xf32> to vector<8x4xf32>
    %165 = arith.addf %162, %164 : vector<8x4xf32>
    %c0_30 = arith.constant 0 : index
    %c0_31 = arith.constant 0 : index
    %166 = vector.load %arg6[%c0_30, %c0_31] : memref<8x4xf32, #tpu.memory_space<vmem>>, vector<8x4xf32>
    tpu.vector_store %arg6[%c0_30, %c0_31], %165 {strides = array<i32>} : memref<8x4xf32, #tpu.memory_space<vmem>>, vector<8x4xf32>,
    return
  }
}

</mosaic_0001>

<bundles_post_ra>
// kernel: tpu_custom_call.1
= control target key start
LH: loop header
LB: loop body
LE: loop exit
PB: predicated region body
PF: predicated region fallthrough
CT: control target
= control target key end

     0   :  { %vm37_vm0 = vcmask 130048   ;;  %v746_v8 = vmov 0.0   ;;  %s747_s13 = smov 32   ;;  %s748_s17 = smov 64   ;;  %vm107_vm5 = vcmask 261120   ;;  %s954_s1 = inlined_call_operand.vmem [shape: f32[16,128], index: 1, kind: input, shape index: {}]   ;;  %s955_s0 = inlined_call_operand.vmem [shape: f32[64,16], index: 0, kind: input, shape index: {}]   ;;  %s956_s2 = inlined_call_operand.vmem [shape: f32[32,128], index: 2, kind: input, shape index: {}]   ;;  %s957_s3 = inlined_call_operand.vmem [shape: f32[1,128], index: 3, kind: input, shape index: {}]   ;;  %s958_s4 = inlined_call_operand.vmem [shape: f32[32,4], index: 4, kind: input, shape index: {}]   ;;  %s959_s5 = inlined_call_operand.vmem [shape: f32[1,4], index: 5, kind: input, shape index: {}]   ;;  %s960_s6 = inlined_call_operand.vmem [shape: f32[8,4], index: 6, kind: output, shape index: {}]  }
   0x1   :  { %v32_v0 = vld [vmem:[%s954_s1 + $0x8] sm:$0xff]  ;;  %v31_v1 = vld [vmem:[%s954_s1] sm:$0xff]  ;;  %v796_v3 = vld [vmem:[%s956_s2 + $0x18] sm:$0xff] }
   0x2   :  { %673 = vmatpush.msra.mxu1 %v32_v0  ;;  %v28_v2 = vld [vmem:[%s955_s0 + $0x28] sm:$0xff]  ;;  %76 = vmatpush.msra.mxu0 %v32_v0  ;;  %v23_v4 = vld [vmem:[%s955_s0] sm:$0xff]  ;;  %v806_v5 = vld [vmem:[%s956_s2 + $0x10] sm:$0xff] }
   0x3   :  { %674 = vmatpush.msra.mxu2 %v32_v0  ;;  %249 = vmatpush.msra.mxu3 %v796_v3  ;;  %v813_v6 = vld [vmem:[%s956_s2 + $0x8] sm:$0xff]  ;;  %v821_v7 = vld [vmem:[%s956_s2] sm:$0xff]  ;;  %v29_v35 = vld [vmem:[%s955_s0 + $0x30] sm:$0xff] }
   0x4   :  { %675 = vmatpush.msra.mxu1 %v31_v1  ;;  %77 = vmatpush.msra.mxu0 %v31_v1  ;;  %v847_v11 = vld [vmem:[%s957_s3] ss:$0 sm:$0xff]  ;;  %v30_v36 = vld [vmem:[%s955_s0 + $0x38] sm:$0xff]  ;;  %v24_v39 = vld [vmem:[%s955_s0 + $0x8] sm:$0xff] }
   0x5   :  { %654 = vmatmul.msk.f32.vlgmr.msra.gmra.mxu1 %vm37_vm0, %v28_v2  ;;  %649 = vmatmul.msk.f32.vlgmr.msra.gmra.mxu0 %vm37_vm0, %v23_v4 }
   0x6   :  { %123 = vmatpush.msrb.mxu1 %v796_v3  ;;  %676 = vmatpush.msra.mxu2 %v31_v1 }
   0x7   :  { %250 = vmatpush.msra.mxu3 %v806_v5  ;;  %655 = vmatmul.msk.f32.vlgmr.msra.gmra.mxu2 %vm37_vm0, %v29_v35 }
   0x8   :  { %186 = vmatpush.msrb.mxu2 %v796_v3  ;;  %124 = vmatpush.msrb.mxu1 %v806_v5 }
   0x9   :  { %251 = vmatpush.msra.mxu3 %v813_v6 }
   0xa   :  { %187 = vmatpush.msrb.mxu2 %v806_v5  ;;  %125 = vmatpush.msrb.mxu1 %v813_v6 }
   0xb   :  { %252 = vmatpush.msra.mxu3 %v821_v7 }
   0xc   :  { %188 = vmatpush.msrb.mxu2 %v813_v6  ;;  %126 = vmatpush.msrb.mxu1 %v821_v7 }
   0xd   :  { %438 = vmatpush.msrb.mxu3 %v796_v3  ;;  %127 = vmatmul.f32.vlgmr.msrb.gmra.mxu1 %v746_v8 }
   0xe   :  { %189 = vmatpush.msrb.mxu2 %v821_v7  ;;  %312 = vmatpush.msra.mxu1 %v796_v3 }
   0xf   :  { %439 = vmatpush.msrb.mxu3 %v806_v5  ;;  %656 = vmatmul.msk.f32.gmra.mxu2 %vm37_vm0, %v30_v36 }
  0x10   :  { %313 = vmatpush.msra.mxu1 %v806_v5  ;;  %375 = vmatpush.msra.mxu2 %v796_v3 }
  0x11   :  { %440 = vmatpush.msrb.mxu3 %v813_v6  ;;  %650 = vmatmul.msk.f32.gmra.mxu0 %vm37_vm0, %v24_v39 }
  0x12   :  { %314 = vmatpush.msra.mxu1 %v813_v6  ;;  %376 = vmatpush.msra.mxu2 %v806_v5 }
  0x13   :  { %441 = vmatpush.msrb.mxu3 %v821_v7 }
  0x14   :  { %315 = vmatpush.msra.mxu1 %v821_v7  ;;  %377 = vmatpush.msra.mxu2 %v813_v6 }
  0x16   :  { %501 = vmatpush.msrb.mxu1 %v796_v3  ;;  %378 = vmatpush.msra.mxu2 %v821_v7 }
  0x18   :  { %502 = vmatpush.msrb.mxu1 %v806_v5 }
  0x1a   :  { %503 = vmatpush.msrb.mxu1 %v813_v6 }
  0x1c   :  { %504 = vmatpush.msrb.mxu1 %v821_v7 }
  0x82   :  { %v842_v9 = vpop.f32.mrf.mxu1  ;;  %v79_v10 = vpop.f32.mrf.mxu0 }
  0x83   :  { %v80_v12 = vadd.f32 %v847_v11, %v79_v10 }
  0x8a   :  { %v128_v13 = vpop.f32.mrf.mxu1  ;;  %v875_v41 = vpop.f32.mrf.mxu2 }
  0x8b   :  { %v131_v14 = vadd.f32 %v128_v13, %v80_v12 }
  0x8d   :  { %682 = vtanh.f32 %v131_v14  ;;  %v657_v16 = vmul.f32 -1.442695, %v131_v14 }
  0x8e   :  { %v82_v43 = vpop.f32.mrf.mxu0 }
  0x8f   :  { %684 = vpow2.f32 %v657_v16  ;;  %v83_v44 = vadd.f32 %v847_v11, %v82_v43 }
  0x92   :  { %v877_v42 = vpop.f32.mrf.mxu2 }
  0x93   :  { %v683_v15 = vpop.eup %682 }
  0x94   :  { %154 = vrot.lane.b32.xlu0 %v683_v15, %s747_s13 }
  0x95   :  { %v685_v17 = vpop.eup %684 }
  0x96   :  { %v135_v18 = vadd.f32 1.0, %v685_v17 }
  0x98   :  { %686 = vrcp.f32 %v135_v18  ;;  %v147_v24 = vand.u32 2147483648, %v135_v18  ;;  %vm141_vm2 = vweird.f32 %v135_v18  ;;  %v145_v25 = vand.u32 2147483647, %v135_v18 }
  0x9a   :  { %v148_v27 = vor.u32 1.1754944e-38, %v147_v24  ;;  %vm146_vm4 = vcmp.eq.f32.partialorder %v145_v25, 8.507059e+37 }
  0x9e   :  { %v687_v19 = vpop.eup %686 }
  0x9f   :  { %v137_v20 = vmul.f32 %v687_v19, %v135_v18  ;;  %vm142_vm1 = vweird.f32 %v687_v19 }
  0xa0   :  { %vm143_vm3 = vmor %vm141_vm2, %vm142_vm1 }
  0xa1   :  { %v138_v21 = vsub.f32 1.0, %v137_v20 }
  0xa3   :  { %v139_v22 = vmul.f32 %v687_v19, %v138_v21 }
  0xa5   :  { %v140_v23 = vadd.f32 %v687_v19, %v139_v22 }
  0xa7   :  { %v144_v26 = vsel %vm143_vm3, %v687_v19, %v140_v23 }
  0xa8   :  { %v149_v29 = vsel %vm146_vm4, %v148_v27, %v144_v26 }
  0xa9   :  { %v152_v31 = vmul.f32 0.0, %v149_v29 }
 0x106   :  { %v155_v28 = vpop.permute.xlu0 %154 }
 0x107   :  { %v157_v30 = vmul.f32 %v155_v28, %v149_v29 }
 0x109   :  { %159 = vrot.lane.b32.xlu0 %v157_v30, %s747_s13 }
 0x17b   :  { %v160_v32 = vpop.permute.xlu0 %159 }
 0x17c   :  { %v162_v33 = vadd.f32 %v160_v32, %v152_v31 }
 0x17e   :  { %688 = vtanh.f32 %v162_v33 }
 0x184   :  { %v689_v34 = vpop.eup %688 }
 0x185   :  { %165 = vrot.lane.b32.xlu1 %v689_v34, %s747_s13 }
 0x1f7   :  { %v166_v37 = vpop.permute.xlu1 %165 }
 0x1f8   :  { %v168_v38 = vmul.f32 %v166_v37, %v149_v29 }
 0x1fa   :  { %170 = vrot.lane.b32.xlu1 %v168_v38, %s748_s17 }
 0x26c   :  { %v171_v40 = vpop.permute.xlu1 %170 }
 0x26d   :  { %658 = vmatmul.msk.f32.vlgmr.msrb.gmra.mxu2 %vm107_vm5, %v171_v40 }
 0x26e   :  { %564 = vmatpush.msrb.mxu2 %v796_v3 }
 0x270   :  { %565 = vmatpush.msrb.mxu2 %v806_v5  ;;  %v25_v5 = vld [vmem:[%s955_s0 + $0x10] sm:$0xff] }
 0x271   :  { %651 = vmatmul.msk.f32.gmra.mxu0 %vm37_vm0, %v25_v5 }
 0x272   :  { %566 = vmatpush.msrb.mxu2 %v813_v6 }
 0x274   :  { %567 = vmatpush.msrb.mxu2 %v821_v7 }
 0x2ee   :  { %v85_v7 = vpop.f32.mrf.mxu0 }
 0x2ef   :  { %v86_v8 = vadd.f32 %v847_v11, %v85_v7 }
 0x2f0   :  { %v191_v45 = vpop.f32.mrf.mxu2 }
 0x2f1   :  { %v194_v46 = vadd.f32 %v191_v45, %v83_v44 }
 0x2f3   :  { %690 = vtanh.f32 %v194_v46  ;;  %v659_v48 = vmul.f32 -1.442695, %v194_v46 }
 0x2f5   :  { %692 = vpow2.f32 %v659_v48 }
 0x2f9   :  { %v691_v47 = vpop.eup %690 }
 0x2fa   :  { %217 = vrot.lane.b32.xlu2 %v691_v47, %s747_s13 }
 0x2fb   :  { %v693_v49 = vpop.eup %692 }
 0x2fc   :  { %v198_v50 = vadd.f32 1.0, %v693_v49 }
 0x2fe   :  { %694 = vrcp.f32 %v198_v50  ;;  %v210_v56 = vand.u32 2147483648, %v198_v50  ;;  %vm204_vm7 = vweird.f32 %v198_v50  ;;  %v208_v57 = vand.u32 2147483647, %v198_v50 }
 0x300   :  { %v211_v59 = vor.u32 1.1754944e-38, %v210_v56  ;;  %vm209_vm9 = vcmp.eq.f32.partialorder %v208_v57, 8.507059e+37 }
 0x304   :  { %v695_v51 = vpop.eup %694 }
 0x305   :  { %v200_v52 = vmul.f32 %v695_v51, %v198_v50  ;;  %vm205_vm6 = vweird.f32 %v695_v51 }
 0x306   :  { %vm206_vm8 = vmor %vm204_vm7, %vm205_vm6 }
 0x307   :  { %v201_v53 = vsub.f32 1.0, %v200_v52 }
 0x309   :  { %v202_v54 = vmul.f32 %v695_v51, %v201_v53 }
 0x30b   :  { %v203_v55 = vadd.f32 %v695_v51, %v202_v54 }
 0x30d   :  { %v207_v58 = vsel %vm206_vm8, %v695_v51, %v203_v55 }
 0x30e   :  { %v212_v61 = vsel %vm209_vm9, %v211_v59, %v207_v58 }
 0x30f   :  { %v215_v63 = vmul.f32 %v212_v61, %v162_v33  ;;  %v26_v33 = vld [vmem:[%s955_s0 + $0x18] sm:$0xff] }
 0x310   :  { %652 = vmatmul.msk.f32.gmra.mxu0 %vm37_vm0, %v26_v33 }
 0x354   :  { %v218_v60 = vpop.permute.xlu2 %217 }
 0x355   :  { %v220_v62 = vmul.f32 %v218_v60, %v212_v61 }
 0x357   :  { %222 = vrot.lane.b32.xlu2 %v220_v62, %s747_s13 }
 0x38d   :  { %v88_v37 = vpop.f32.mrf.mxu0 }
 0x38e   :  { %v89_v38 = vadd.f32 %v847_v11, %v88_v37 }
 0x3b1   :  { %v223_v0 = vpop.permute.xlu2 %222 }
 0x3b2   :  { %v225_v1 = vadd.f32 %v223_v0, %v215_v63 }
 0x3b4   :  { %696 = vtanh.f32 %v225_v1 }
 0x3ba   :  { %v697_v2 = vpop.eup %696 }
 0x3bb   :  { %228 = vrot.lane.b32.xlu0 %v697_v2, %s747_s13 }
 0x42d   :  { %v229_v3 = vpop.permute.xlu0 %228 }
 0x42e   :  { %v231_v4 = vmul.f32 %v229_v3, %v212_v61 }
 0x430   :  { %233 = vrot.lane.b32.xlu1 %v231_v4, %s748_s17 }
 0x4a2   :  { %v234_v6 = vpop.permute.xlu1 %233 }
 0x4a3   :  { %660 = vmatmul.msk.f32.vlgmr.msra.gmra.mxu3 %vm107_vm5, %v234_v6 }
 0x526   :  { %v254_v10 = vpop.f32.mrf.mxu3 }
 0x527   :  { %v257_v12 = vadd.f32 %v254_v10, %v86_v8 }
 0x529   :  { %698 = vtanh.f32 %v257_v12  ;;  %v661_v14 = vmul.f32 -1.442695, %v257_v12 }
 0x52b   :  { %700 = vpow2.f32 %v661_v14 }
 0x52f   :  { %v699_v13 = vpop.eup %698 }
 0x530   :  { %280 = vrot.lane.b32.xlu2 %v699_v13, %s747_s13 }
 0x531   :  { %v701_v15 = vpop.eup %700 }
 0x532   :  { %v261_v16 = vadd.f32 1.0, %v701_v15 }
 0x534   :  { %702 = vrcp.f32 %v261_v16  ;;  %v273_v22 = vand.u32 2147483648, %v261_v16  ;;  %vm267_vm11 = vweird.f32 %v261_v16  ;;  %v271_v23 = vand.u32 2147483647, %v261_v16 }
 0x536   :  { %v274_v25 = vor.u32 1.1754944e-38, %v273_v22  ;;  %vm272_vm13 = vcmp.eq.f32.partialorder %v271_v23, 8.507059e+37 }
 0x53a   :  { %v703_v17 = vpop.eup %702 }
 0x53b   :  { %v263_v18 = vmul.f32 %v703_v17, %v261_v16  ;;  %vm268_vm10 = vweird.f32 %v703_v17 }
 0x53c   :  { %vm269_vm12 = vmor %vm267_vm11, %vm268_vm10 }
 0x53d   :  { %v264_v19 = vsub.f32 1.0, %v263_v18 }
 0x53f   :  { %v265_v20 = vmul.f32 %v703_v17, %v264_v19 }
 0x541   :  { %v266_v21 = vadd.f32 %v703_v17, %v265_v20 }
 0x543   :  { %v270_v24 = vsel %vm269_vm12, %v703_v17, %v266_v21 }
 0x544   :  { %v275_v27 = vsel %vm272_vm13, %v274_v25, %v270_v24 }
 0x545   :  { %v278_v29 = vmul.f32 %v275_v27, %v225_v1  ;;  %v27_v1 = vld [vmem:[%s955_s0 + $0x20] sm:$0xff] }
 0x546   :  { %653 = vmatmul.msk.f32.gmra.mxu0 %vm37_vm0, %v27_v1 }
 0x58a   :  { %v281_v26 = vpop.permute.xlu2 %280 }
 0x58b   :  { %v283_v28 = vmul.f32 %v281_v26, %v275_v27 }
 0x58d   :  { %285 = vrot.lane.b32.xlu0 %v283_v28, %s747_s13 }
 0x5c3   :  { %v91_v3 = vpop.f32.mrf.mxu0 }
 0x5c4   :  { %v92_v4 = vadd.f32 %v847_v11, %v91_v3 }
 0x5ff   :  { %v286_v30 = vpop.permute.xlu0 %285 }
 0x600   :  { %v288_v31 = vadd.f32 %v286_v30, %v278_v29 }
 0x602   :  { %704 = vtanh.f32 %v288_v31 }
 0x608   :  { %v705_v32 = vpop.eup %704 }
 0x609   :  { %291 = vrot.lane.b32.xlu1 %v705_v32, %s747_s13  ;;  %v95_v32 = vadd.f32 %v847_v11, %v842_v9 }
 0x67b   :  { %v292_v34 = vpop.permute.xlu1 %291 }
 0x67c   :  { %v294_v35 = vmul.f32 %v292_v34, %v275_v27 }
 0x67e   :  { %296 = vrot.lane.b32.xlu2 %v294_v35, %s748_s17 }
 0x6d8   :  { %v297_v36 = vpop.permute.xlu2 %296 }
 0x6d9   :  { %662 = vmatmul.msk.f32.vlgmr.msra.gmra.mxu1 %vm107_vm5, %v297_v36 }
 0x756   :  { %v317_v39 = vpop.f32.mrf.mxu1 }
 0x757   :  { %v320_v40 = vadd.f32 %v317_v39, %v89_v38 }
 0x759   :  { %706 = vtanh.f32 %v320_v40  ;;  %v663_v44 = vmul.f32 -1.442695, %v320_v40 }
 0x75b   :  { %708 = vpow2.f32 %v663_v44 }
 0x75f   :  { %v707_v43 = vpop.eup %706 }
 0x760   :  { %343 = vrot.lane.b32.xlu0 %v707_v43, %s747_s13 }
 0x761   :  { %v709_v45 = vpop.eup %708 }
 0x762   :  { %v324_v46 = vadd.f32 1.0, %v709_v45 }
 0x764   :  { %710 = vrcp.f32 %v324_v46  ;;  %v336_v52 = vand.u32 2147483648, %v324_v46  ;;  %vm330_vm15 = vweird.f32 %v324_v46  ;;  %v334_v53 = vand.u32 2147483647, %v324_v46 }
 0x766   :  { %v337_v55 = vor.u32 1.1754944e-38, %v336_v52  ;;  %vm335_vm2 = vcmp.eq.f32.partialorder %v334_v53, 8.507059e+37 }
 0x76a   :  { %v711_v47 = vpop.eup %710 }
 0x76b   :  { %v326_v48 = vmul.f32 %v711_v47, %v324_v46  ;;  %vm331_vm14 = vweird.f32 %v711_v47 }
 0x76c   :  { %vm332_vm1 = vmor %vm330_vm15, %vm331_vm14 }
 0x76d   :  { %v327_v49 = vsub.f32 1.0, %v326_v48 }
 0x76f   :  { %v328_v50 = vmul.f32 %v711_v47, %v327_v49 }
 0x771   :  { %v329_v51 = vadd.f32 %v711_v47, %v328_v50 }
 0x773   :  { %v333_v54 = vsel %vm332_vm1, %v711_v47, %v329_v51 }
 0x774   :  { %v338_v57 = vsel %vm335_vm2, %v337_v55, %v333_v54 }
 0x775   :  { %v341_v59 = vmul.f32 %v338_v57, %v288_v31 }
 0x7d2   :  { %v344_v56 = vpop.permute.xlu0 %343 }
 0x7d3   :  { %v346_v58 = vmul.f32 %v344_v56, %v338_v57 }
 0x7d5   :  { %348 = vrot.lane.b32.xlu1 %v346_v58, %s747_s13 }
 0x847   :  { %v349_v60 = vpop.permute.xlu1 %348 }
 0x848   :  { %v351_v61 = vadd.f32 %v349_v60, %v341_v59  ;;  %v98_v59 = vadd.f32 %v847_v11, %v875_v41 }
 0x84a   :  { %712 = vtanh.f32 %v351_v61 }
 0x850   :  { %v713_v62 = vpop.eup %712 }
 0x851   :  { %354 = vrot.lane.b32.xlu2 %v713_v62, %s747_s13 }
 0x8ab   :  { %v355_v63 = vpop.permute.xlu2 %354 }
 0x8ac   :  { %v357_v0 = vmul.f32 %v355_v63, %v338_v57 }
 0x8ae   :  { %359 = vrot.lane.b32.xlu0 %v357_v0, %s748_s17 }
 0x920   :  { %v360_v2 = vpop.permute.xlu0 %359 }
 0x921   :  { %664 = vmatmul.msk.f32.vlgmr.msra.gmra.mxu2 %vm107_vm5, %v360_v2 }
 0x9a4   :  { %v380_v5 = vpop.f32.mrf.mxu2 }
 0x9a5   :  { %v383_v6 = vadd.f32 %v380_v5, %v92_v4 }
 0x9a7   :  { %714 = vtanh.f32 %v383_v6  ;;  %v665_v8 = vmul.f32 -1.442695, %v383_v6 }
 0x9a9   :  { %716 = vpow2.f32 %v665_v8 }
 0x9ad   :  { %v715_v7 = vpop.eup %714 }
 0x9ae   :  { %406 = vrot.lane.b32.xlu1 %v715_v7, %s747_s13 }
 0x9af   :  { %v717_v10 = vpop.eup %716 }
 0x9b0   :  { %v387_v12 = vadd.f32 1.0, %v717_v10 }
 0x9b2   :  { %718 = vrcp.f32 %v387_v12  ;;  %v399_v18 = vand.u32 2147483648, %v387_v12  ;;  %vm393_vm3 = vweird.f32 %v387_v12  ;;  %v397_v19 = vand.u32 2147483647, %v387_v12 }
 0x9b4   :  { %v400_v21 = vor.u32 1.1754944e-38, %v399_v18  ;;  %vm398_vm6 = vcmp.eq.f32.partialorder %v397_v19, 8.507059e+37 }
 0x9b8   :  { %v719_v13 = vpop.eup %718 }
 0x9b9   :  { %v389_v14 = vmul.f32 %v719_v13, %v387_v12  ;;  %vm394_vm0 = vweird.f32 %v719_v13 }
 0x9ba   :  { %vm395_vm4 = vmor %vm393_vm3, %vm394_vm0  ;;  %vm643_vm3 = vcmask 31744  }
 0x9bb   :  { %v390_v15 = vsub.f32 1.0, %v389_v14 }
 0x9bd   :  { %v391_v16 = vmul.f32 %v719_v13, %v390_v15 }
 0x9bf   :  { %v392_v17 = vadd.f32 %v719_v13, %v391_v16 }
 0x9c1   :  { %v396_v20 = vsel %vm395_vm4, %v719_v13, %v392_v17 }
 0x9c2   :  { %v401_v23 = vsel %vm398_vm6, %v400_v21, %v396_v20 }
 0x9c3   :  { %v404_v25 = vmul.f32 %v401_v23, %v351_v61 }
 0xa20   :  { %v407_v22 = vpop.permute.xlu1 %406 }
 0xa21   :  { %v409_v24 = vmul.f32 %v407_v22, %v401_v23  ;;  %v101_v22 = vadd.f32 %v847_v11, %v877_v42 }
 0xa23   :  { %411 = vrot.lane.b32.xlu2 %v409_v24, %s747_s13 }
 0xa7d   :  { %v412_v26 = vpop.permute.xlu2 %411 }
 0xa7e   :  { %v414_v27 = vadd.f32 %v412_v26, %v404_v25 }
 0xa80   :  { %720 = vtanh.f32 %v414_v27 }
 0xa86   :  { %v721_v28 = vpop.eup %720 }
 0xa87   :  { %417 = vrot.lane.b32.xlu0 %v721_v28, %s747_s13 }
 0xaf9   :  { %v418_v29 = vpop.permute.xlu0 %417 }
 0xafa   :  { %v420_v30 = vmul.f32 %v418_v29, %v401_v23 }
 0xafc   :  { %422 = vrot.lane.b32.xlu1 %v420_v30, %s748_s17 }
 0xb6e   :  { %v423_v31 = vpop.permute.xlu1 %422 }
 0xb6f   :  { %666 = vmatmul.msk.f32.vlgmr.msrb.gmra.mxu3 %vm107_vm5, %v423_v31 }
 0xbf2   :  { %v443_v33 = vpop.f32.mrf.mxu3 }
 0xbf3   :  { %v446_v34 = vadd.f32 %v443_v33, %v95_v32 }
 0xbf5   :  { %722 = vtanh.f32 %v446_v34  ;;  %v667_v36 = vmul.f32 -1.442695, %v446_v34 }
 0xbf7   :  { %724 = vpow2.f32 %v667_v36 }
 0xbfb   :  { %v723_v35 = vpop.eup %722 }
 0xbfc   :  { %469 = vrot.lane.b32.xlu2 %v723_v35, %s747_s13 }
 0xbfd   :  { %v725_v37 = vpop.eup %724 }
 0xbfe   :  { %v450_v38 = vadd.f32 1.0, %v725_v37 }
 0xc00   :  { %726 = vrcp.f32 %v450_v38  ;;  %v462_v46 = vand.u32 2147483648, %v450_v38  ;;  %vm456_vm8 = vweird.f32 %v450_v38  ;;  %v460_v9 = vand.u32 2147483647, %v450_v38 }
 0xc02   :  { %v463_v48 = vor.u32 1.1754944e-38, %v462_v46  ;;  %vm461_vm10 = vcmp.eq.f32.partialorder %v460_v9, 8.507059e+37  ;;  %v612_v46 = vld [vmem:[%s958_s4 + $0x10] sm:$0xff]  ;;  %v611_v9 = vld [vmem:[%s958_s4 + $0x8] sm:$0xff] }
 0xc06   :  { %v727_v39 = vpop.eup %726 }
 0xc07   :  { %v452_v40 = vmul.f32 %v727_v39, %v450_v38  ;;  %vm457_vm7 = vweird.f32 %v727_v39 }
 0xc08   :  { %vm458_vm9 = vmor %vm456_vm8, %vm457_vm7 }
 0xc09   :  { %v453_v43 = vsub.f32 1.0, %v452_v40 }
 0xc0b   :  { %v454_v44 = vmul.f32 %v727_v39, %v453_v43 }
 0xc0d   :  { %v455_v45 = vadd.f32 %v727_v39, %v454_v44 }
 0xc0f   :  { %v459_v47 = vsel %vm458_vm9, %v727_v39, %v455_v45  ;;  %v613_v45 = vld [vmem:[%s958_s4 + $0x18] sm:$0xff] }
 0xc10   :  { %v464_v50 = vsel %vm461_vm10, %v463_v48, %v459_v47  ;;  %635 = vmatpush.msra.mxu3 %v613_v45  ;;  %v610_v47 = vld [vmem:[%s958_s4] sm:$0xff] }
 0xc11   :  { %v467_v52 = vmul.f32 %v464_v50, %v414_v27 }
 0xc12   :  { %636 = vmatpush.msra.mxu3 %v612_v46 }
 0xc14   :  { %637 = vmatpush.msra.mxu3 %v611_v9 }
 0xc16   :  { %638 = vmatpush.msra.mxu3 %v610_v47 }
 0xc56   :  { %v470_v49 = vpop.permute.xlu2 %469 }
 0xc57   :  { %v472_v51 = vmul.f32 %v470_v49, %v464_v50 }
 0xc59   :  { %474 = vrot.lane.b32.xlu0 %v472_v51, %s747_s13  ;;  %v681_v51 = vld [vmem:[%s959_s5] ss:$0 sm:$0xff] }
 0xccb   :  { %v475_v53 = vpop.permute.xlu0 %474 }
 0xccc   :  { %v477_v54 = vadd.f32 %v475_v53, %v467_v52 }
 0xcce   :  { %728 = vtanh.f32 %v477_v54 }
 0xcd4   :  { %v729_v55 = vpop.eup %728 }
 0xcd5   :  { %480 = vrot.lane.b32.xlu1 %v729_v55, %s747_s13 }
 0xd47   :  { %v481_v56 = vpop.permute.xlu1 %480 }
 0xd48   :  { %v483_v57 = vmul.f32 %v481_v56, %v464_v50 }
 0xd4a   :  { %485 = vrot.lane.b32.xlu2 %v483_v57, %s748_s17 }
 0xda4   :  { %v486_v58 = vpop.permute.xlu2 %485 }
 0xda5   :  { %668 = vmatmul.msk.f32.vlgmr.msrb.gmra.mxu1 %vm107_vm5, %v486_v58 }
 0xe22   :  { %v506_v60 = vpop.f32.mrf.mxu1 }
 0xe23   :  { %v509_v61 = vadd.f32 %v506_v60, %v98_v59 }
 0xe25   :  { %730 = vtanh.f32 %v509_v61  ;;  %v669_v63 = vmul.f32 -1.442695, %v509_v61 }
 0xe27   :  { %732 = vpow2.f32 %v669_v63 }
 0xe2b   :  { %v731_v62 = vpop.eup %730 }
 0xe2c   :  { %532 = vrot.lane.b32.xlu0 %v731_v62, %s747_s13 }
 0xe2d   :  { %v733_v0 = vpop.eup %732 }
 0xe2e   :  { %v513_v1 = vadd.f32 1.0, %v733_v0 }
 0xe30   :  { %734 = vrcp.f32 %v513_v1  ;;  %v525_v7 = vand.u32 2147483648, %v513_v1  ;;  %vm519_vm12 = vweird.f32 %v513_v1  ;;  %v523_v41 = vand.u32 2147483647, %v513_v1 }
 0xe32   :  { %v526_v10 = vor.u32 1.1754944e-38, %v525_v7  ;;  %vm524_vm14 = vcmp.eq.f32.partialorder %v523_v41, 8.507059e+37 }
 0xe36   :  { %v735_v2 = vpop.eup %734 }
 0xe37   :  { %v515_v3 = vmul.f32 %v735_v2, %v513_v1  ;;  %vm520_vm11 = vweird.f32 %v735_v2 }
 0xe38   :  { %vm521_vm13 = vmor %vm519_vm12, %vm520_vm11 }
 0xe39   :  { %v516_v4 = vsub.f32 1.0, %v515_v3 }
 0xe3b   :  { %v517_v5 = vmul.f32 %v735_v2, %v516_v4 }
 0xe3d   :  { %v518_v6 = vadd.f32 %v735_v2, %v517_v5 }
 0xe3f   :  { %v522_v8 = vsel %vm521_vm13, %v735_v2, %v518_v6 }
 0xe40   :  { %v527_v13 = vsel %vm524_vm14, %v526_v10, %v522_v8 }
 0xe41   :  { %v530_v15 = vmul.f32 %v527_v13, %v477_v54 }
 0xe9e   :  { %v533_v12 = vpop.permute.xlu0 %532 }
 0xe9f   :  { %v535_v14 = vmul.f32 %v533_v12, %v527_v13 }
 0xea1   :  { %537 = vrot.lane.b32.xlu1 %v535_v14, %s747_s13 }
 0xf13   :  { %v538_v16 = vpop.permute.xlu1 %537 }
 0xf14   :  { %v540_v17 = vadd.f32 %v538_v16, %v530_v15 }
 0xf16   :  { %736 = vtanh.f32 %v540_v17 }
 0xf1c   :  { %v737_v18 = vpop.eup %736 }
 0xf1d   :  { %543 = vrot.lane.b32.xlu2 %v737_v18, %s747_s13 }
 0xf77   :  { %v544_v19 = vpop.permute.xlu2 %543 }
 0xf78   :  { %v546_v20 = vmul.f32 %v544_v19, %v527_v13 }
 0xf7a   :  { %548 = vrot.lane.b32.xlu0 %v546_v20, %s748_s17 }
 0xfec   :  { %v549_v21 = vpop.permute.xlu0 %548 }
 0xfed   :  { %670 = vmatmul.msk.f32.vlgmr.msrb.gmra.mxu2 %vm107_vm5, %v549_v21 }
0x1070   :  { %v569_v23 = vpop.f32.mrf.mxu2 }
0x1071   :  { %v572_v24 = vadd.f32 %v569_v23, %v101_v22 }
0x1073   :  { %738 = vtanh.f32 %v572_v24  ;;  %v671_v26 = vmul.f32 -1.442695, %v572_v24 }
0x1075   :  { %740 = vpow2.f32 %v671_v26 }
0x1079   :  { %v739_v25 = vpop.eup %738 }
0x107a   :  { %595 = vrot.lane.b32.xlu1 %v739_v25, %s747_s13 }
0x107b   :  { %v741_v27 = vpop.eup %740 }
0x107c   :  { %v576_v28 = vadd.f32 1.0, %v741_v27 }
0x107e   :  { %742 = vrcp.f32 %v576_v28  ;;  %v588_v34 = vand.u32 2147483648, %v576_v28  ;;  %vm582_vm1 = vweird.f32 %v576_v28  ;;  %v586_v11 = vand.u32 2147483647, %v576_v28 }
0x1080   :  { %v589_v35 = vor.u32 1.1754944e-38, %v588_v34  ;;  %vm587_vm0 = vcmp.eq.f32.partialorder %v586_v11, 8.507059e+37 }
0x1084   :  { %v743_v29 = vpop.eup %742 }
0x1085   :  { %v578_v30 = vmul.f32 %v743_v29, %v576_v28  ;;  %vm583_vm15 = vweird.f32 %v743_v29 }
0x1086   :  { %vm584_vm2 = vmor %vm582_vm1, %vm583_vm15 }
0x1087   :  { %v579_v31 = vsub.f32 1.0, %v578_v30 }
0x1089   :  { %v580_v32 = vmul.f32 %v743_v29, %v579_v31 }
0x108b   :  { %v581_v33 = vadd.f32 %v743_v29, %v580_v32 }
0x108d   :  { %v585_v42 = vsel %vm584_vm2, %v743_v29, %v581_v33 }
0x108e   :  { %v590_v37 = vsel %vm587_vm0, %v589_v35, %v585_v42 }
0x108f   :  { %v593_v39 = vmul.f32 %v590_v37, %v540_v17 }
0x10ec   :  { %v596_v36 = vpop.permute.xlu1 %595 }
0x10ed   :  { %v598_v38 = vmul.f32 %v596_v36, %v590_v37 }
0x10ef   :  { %600 = vrot.lane.b32.xlu2 %v598_v38, %s747_s13 }
0x1149   :  { %v601_v40 = vpop.permute.xlu2 %600 }
0x114a   :  { %v603_v43 = vadd.f32 %v601_v40, %v593_v39 }
0x114c   :  { %744 = vtanh.f32 %v603_v43 }
0x1152   :  { %v745_v44 = vpop.eup %744 }
0x1153   :  { %606 = vrot.lane.b32.xlu0 %v745_v44, %s747_s13 }
0x11c5   :  { %v607_v48 = vpop.permute.xlu0 %606 }
0x11c6   :  { %v609_v49 = vmul.f32 %v607_v48, %v590_v37 }
0x11c8   :  { %619 = vrot.lane.b32.xlu1 %v609_v49, %s748_s17 }
0x123a   :  { %v620_v50 = vpop.permute.xlu1 %619 }
0x123b   :  { %672 = vmatmul.msk.f32.vlgmr.msra.gmra.mxu3 %vm107_vm5, %v620_v50 }
0x12be   :  { %v640_v52 = vpop.f32.mrf.mxu3 }
0x12bf   :  { %v641_v53 = vadd.f32 %v681_v51, %v640_v52 }
0x12c1   :  { %644 = vst.msk [vmem:[%s960_s6] sm:$0xff] %vm643_vm3, %v641_v53 }

</bundles_post_ra>
